<compile_context>
chip_gen: v7x
topology: tpu7x:2x2x1
jax: 0.10.0
libtpu: 0.0.40
codegen_flags: <defaults>
</compile_context>

<pallas_src>
import jax
import jax.numpy as jnp
from jax.experimental import pallas as pl
from jax.experimental.pallas import tpu as pltpu


# ----------------------------------------------------------------------------
# Fused SKConv kernel (no grid; every operand lives whole in VMEM)
# ----------------------------------------------------------------------------
def skconv_kernel(patches_ref, w_ref, shift_ref, gap_ref,
                  wfc_ref, bfc_ref, wfcs_ref, bfcs_ref, out_ref):
    # patches_ref: (N*HW, 9*C)  im2col activations (all pixels, all 9 taps)
    # w_ref:       (9*C, M*C)   BN-folded block-diag conv weights, M branches
    #                           fused along the output columns
    # shift_ref:   (1, M*C)     conv_bias * bn_scale + bn_shift
    # gap_ref:     (N, N*HW)    per-sample mean-pooling matrix (1/HW entries)
    # wfc_ref:     (C, d)       squeeze fc;     bfc_ref:  (1, d)
    # wfcs_ref:    (d, M*C)     all branch fcs; bfcs_ref: (1, M*C)
    # out_ref:     (N, HW, C)   attention-weighted sum of branch features
    N, HW, C = out_ref.shape
    M = w_ref.shape[1] // C

    # 1) all-branch 3x3 conv as ONE MXU matmul (K = 9*C) + folded BN + ReLU
    acc = jnp.dot(patches_ref[...], w_ref[...],
                  preferred_element_type=jnp.float32)            # (N*HW, M*C)
    feas_flat = jnp.maximum(acc + shift_ref[...], 0.0)

    # 2) GAP of fea_U = sum_m feas_m, expressed as a small MXU matmul
    pooled = jnp.dot(gap_ref[...], feas_flat,
                     preferred_element_type=jnp.float32)         # (N, M*C)
    fea_s = pooled[:, 0:C]
    for m in range(1, M):
        fea_s = fea_s + pooled[:, m * C:(m + 1) * C]             # (N, C)

    # 3) squeeze fc + all-branch excitation logits in one dot
    fea_z = jnp.dot(fea_s, wfc_ref[...],
                    preferred_element_type=jnp.float32) + bfc_ref[...]    # (N, d)
    logits = jnp.dot(fea_z, wfcs_ref[...],
                     preferred_element_type=jnp.float32) + bfcs_ref[...]  # (N, M*C)

    # 4) softmax across the branch axis (per sample & channel), max-stabilized
    lg = [logits[:, m * C:(m + 1) * C] for m in range(M)]
    mx = lg[0]
    for m in range(1, M):
        mx = jnp.maximum(mx, lg[m])
    ex = [jnp.exp(l - mx) for l in lg]
    den = ex[0]
    for m in range(1, M):
        den = den + ex[m]
    inv = 1.0 / den

    # 5) attention-weighted sum of branch features (sublane broadcast over HW)
    feas = feas_flat.reshape(N, HW, M * C)
    fea_v = feas[:, :, 0:C] * (ex[0] * inv)[:, None, :]
    for m in range(1, M):
        fea_v = fea_v + feas[:, :, m * C:(m + 1) * C] * (ex[m] * inv)[:, None, :]

    out_ref[...] = fea_v.astype(out_ref.dtype)


# ----------------------------------------------------------------------------
# Wrapper: layout plumbing + parameter folding in plain JAX, one pallas_call
# ----------------------------------------------------------------------------
def skconv_forward_fn(x_nchw, w_full, conv_b, bn_scale, bn_shift,
                      wfc, bfc, wfcs, bfcs):
    N, C, H, W = x_nchw.shape
    M = w_full.shape[0]
    d = wfc.shape[1]
    HW = H * W

    # NCHW -> NHWC, pad=1, im2col -> (N*HW, 9*C) with tap order (dy, dx, ci)
    x = jnp.transpose(x_nchw, (0, 2, 3, 1))
    xp = jnp.pad(x, ((0, 0), (1, 1), (1, 1), (0, 0)))
    taps = [xp[:, dy:dy + H, dx:dx + W, :] for dy in range(3) for dx in range(3)]
    patches = jnp.concatenate(taps, axis=-1).reshape(N * HW, 9 * C)

    # fold inference BN + conv bias into the matmul; fuse M branches on columns
    w_scaled = w_full * bn_scale[:, None, None, None, :]            # (M,3,3,C,C)
    w_all = jnp.transpose(w_scaled, (1, 2, 3, 0, 4)).reshape(9 * C, M * C)
    shift_all = (conv_b * bn_scale + bn_shift).reshape(1, M * C)

    # attention fcs fused along columns
    wfcs_all = jnp.transpose(wfcs, (1, 0, 2)).reshape(d, M * C)
    bfcs_all = bfcs.reshape(1, M * C)

    # per-sample mean-pooling selector (GAP done as an MXU matmul in-kernel)
    pix_sample = jnp.arange(N * HW) // HW
    gap_mat = (pix_sample[None, :] == jnp.arange(N)[:, None]
               ).astype(jnp.float32) / float(HW)                    # (N, N*HW)

    out = pl.pallas_call(
        skconv_kernel,
        out_shape=jax.ShapeDtypeStruct((N, HW, C), jnp.float32),
        in_specs=[pl.BlockSpec(memory_space=pltpu.MemorySpace.VMEM)
                  for _ in range(8)],
        out_specs=pl.BlockSpec(memory_space=pltpu.MemorySpace.VMEM),
    )(patches, w_all, shift_all, gap_mat, wfc, bfc.reshape(1, d),
      wfcs_all, bfcs_all)

    return jnp.transpose(out.reshape(N, H, W, C), (0, 3, 1, 2))     # -> NCHW


skconv_forward = jax.jit(skconv_forward_fn)


# ----------------------------------------------------------------------------
# Pure-JAX reference (for correctness check)
# ----------------------------------------------------------------------------
def reference(x_nchw, w_full, conv_b, bn_scale, bn_shift, wfc, bfc, wfcs, bfcs):
    x = jnp.transpose(x_nchw, (0, 2, 3, 1))
    M = w_full.shape[0]
    feas = []
    for m in range(M):
        y = jax.lax.conv_general_dilated(
            x, w_full[m], (1, 1), "SAME",
            dimension_numbers=("NHWC", "HWIO", "NHWC"))
        y = y + conv_b[m]
        y = y * bn_scale[m] + bn_shift[m]
        feas.append(jnp.maximum(y, 0.0))
    feas = jnp.stack(feas, 0)                                 # (M,N,H,W,C)
    fea_U = feas.sum(0)
    fea_s = fea_U.mean(axis=(1, 2))
    fea_z = fea_s @ wfc + bfc
    logits = jnp.stack([fea_z @ wfcs[m] + bfcs[m] for m in range(M)], 0)
    att = jax.nn.softmax(logits, axis=0)                      # softmax over M
    fea_v = (feas * att[:, :, None, None, :]).sum(0)
    return jnp.transpose(fea_v, (0, 3, 1, 2))


# ----------------------------------------------------------------------------
# Deterministic parameter construction (synthetic, matches SKConv shapes)
# ----------------------------------------------------------------------------
def make_params(key, features, M, G, r, L):
    C = features
    Cg = C // G
    d = max(int(C / r), L)
    ks = jax.random.split(key, 10)

    # grouped conv weights in PyTorch layout (out, in/groups, kH, kW)
    w_grouped = 0.1 * jax.random.normal(ks[0], (M, C, Cg, 3, 3), jnp.float32)
    conv_b = 0.1 * jax.random.normal(ks[1], (M, C), jnp.float32)

    # BatchNorm (inference-mode running stats), folded into scale/shift
    gamma = jax.random.uniform(ks[2], (M, C), jnp.float32, 0.5, 1.5)
    beta = 0.1 * jax.random.normal(ks[3], (M, C), jnp.float32)
    rmean = 0.1 * jax.random.normal(ks[4], (M, C), jnp.float32)
    rvar = jax.random.uniform(ks[5], (M, C), jnp.float32, 0.5, 1.5)
    eps = 1e-5
    bn_scale = gamma / jnp.sqrt(rvar + eps)
    bn_shift = beta - rmean * bn_scale

    # fc: Linear(C -> d); fcs[m]: Linear(d -> C); stored transposed (y = x @ W)
    wfc = 0.1 * jax.random.normal(ks[6], (C, d), jnp.float32)
    bfc = 0.1 * jax.random.normal(ks[7], (d,), jnp.float32)
    wfcs = 0.1 * jax.random.normal(ks[8], (M, d, C), jnp.float32)
    bfcs = 0.1 * jax.random.normal(ks[9], (M, C), jnp.float32)

    # grouped conv == dense conv with block-diagonal HWIO weight
    # (acceptable densification while C <= 128; keep groups at production C/G)
    w_full = jnp.zeros((M, 3, 3, C, C), jnp.float32)
    for m in range(M):
        for g in range(G):
            blk = w_grouped[m, g * Cg:(g + 1) * Cg]           # (Cg_out, Cg_in, 3, 3)
            blk = jnp.transpose(blk, (2, 3, 1, 0))            # (3, 3, Cg_in, Cg_out)
            w_full = w_full.at[m, :, :,
                               g * Cg:(g + 1) * Cg,
                               g * Cg:(g + 1) * Cg].set(blk)

    return dict(w_full=w_full, conv_b=conv_b, bn_scale=bn_scale,
                bn_shift=bn_shift, wfc=wfc, bfc=bfc, wfcs=wfcs, bfcs=bfcs, d=d)


if __name__ == "__main__":
    # SKConv(features=32, WH=8, M=2, G=4, r=2, stride=1, L=16)  -> d = 16
    N, C, H, W = 2, 32, 8, 8
    M, G, r, L = 2, 4, 2, 16

    key = jax.random.PRNGKey(0)
    kx, kp = jax.random.split(key)
    x = jax.random.normal(kx, (N, C, H, W), jnp.float32)      # NCHW like PyTorch
    p = make_params(kp, C, M, G, r, L)

    out = skconv_forward(x, p["w_full"], p["conv_b"], p["bn_scale"],
                         p["bn_shift"], p["wfc"], p["bfc"], p["wfcs"], p["bfcs"])
    out = jax.block_until_ready(out)

    ref = reference(x, p["w_full"], p["conv_b"], p["bn_scale"], p["bn_shift"],
                    p["wfc"], p["bfc"], p["wfcs"], p["bfcs"])
    ref = jax.block_until_ready(ref)

    assert out.shape == (N, C, H, W)
    max_err = float(jnp.max(jnp.abs(out - ref)))
    assert max_err < 1e-3, f"mismatch vs reference: {max_err}"

    print("KERNEL_OK")
</pallas_src>

<mosaic_0001>
module attributes {stable_mosaic.version = 11 : i64} {
  func.func @skconv_kernel(%arg0: memref<128x288xf32, #tpu.memory_space<vmem>>, %arg1: memref<288x64xf32, #tpu.memory_space<vmem>>, %arg2: memref<1x64xf32, #tpu.memory_space<vmem>>, %arg3: memref<2x128xf32, #tpu.memory_space<vmem>>, %arg4: memref<32x16xf32, #tpu.memory_space<vmem>>, %arg5: memref<1x16xf32, #tpu.memory_space<vmem>>, %arg6: memref<16x64xf32, #tpu.memory_space<vmem>>, %arg7: memref<1x64xf32, #tpu.memory_space<vmem>>, %arg8: memref<2x64x32xf32, #tpu.memory_space<vmem>>) attributes {dimension_semantics = [], scalar_prefetch = 0 : i64, scratch_operands = 0 : i64, tpu.core_type = #tpu.core_type<tc>} {
    %c0 = arith.constant 0 : index
    %c0_0 = arith.constant 0 : index
    %0 = vector.load %arg0[%c0, %c0_0] : memref<128x288xf32, #tpu.memory_space<vmem>>, vector<128x288xf32>
    %c0_1 = arith.constant 0 : index
    %c0_2 = arith.constant 0 : index
    %1 = vector.load %arg1[%c0_1, %c0_2] : memref<288x64xf32, #tpu.memory_space<vmem>>, vector<288x64xf32>
    %cst = arith.constant dense<0.000000e+00> : vector<128x64xf32>
    %2 = tpu.matmul %0, %1, %cst {dimension_numbers = #tpu.dot_dimension_numbers<[1], [0], [0], [1], [0, 0, 1, 1], [], []>} : vector<128x288xf32>, vector<288x64xf32>, vector<128x64xf32> -> vector<128x64xf32>
    %c0_3 = arith.constant 0 : index
    %c0_4 = arith.constant 0 : index
    %3 = vector.load %arg2[%c0_3, %c0_4] : memref<1x64xf32, #tpu.memory_space<vmem>>, vector<1x64xf32>
    %4 = vector.broadcast %3 : vector<1x64xf32> to vector<128x64xf32>
    %5 = arith.addf %2, %4 : vector<128x64xf32>
    %cst_5 = arith.constant 0.000000e+00 : f32
    %6 = vector.broadcast %cst_5 : f32 to vector<128x64xf32>
    %7 = arith.maximumf %5, %6 : vector<128x64xf32>
    %c0_6 = arith.constant 0 : index
    %c0_7 = arith.constant 0 : index
    %8 = vector.load %arg3[%c0_6, %c0_7] : memref<2x128xf32, #tpu.memory_space<vmem>>, vector<2x128xf32>
    %cst_8 = arith.constant dense<0.000000e+00> : vector<2x64xf32>
    %9 = tpu.matmul %8, %7, %cst_8 {dimension_numbers = #tpu.dot_dimension_numbers<[1], [0], [0], [1], [0, 0, 1, 1], [], []>} : vector<2x128xf32>, vector<128x64xf32>, vector<2x64xf32> -> vector<2x64xf32>
    %10 = vector.extract_strided_slice %9 {offsets = [0, 0], sizes = [2, 32], strides = [1, 1]} : vector<2x64xf32> to vector<2x32xf32>
    %11 = vector.extract_strided_slice %9 {offsets = [0, 32], sizes = [2, 32], strides = [1, 1]} : vector<2x64xf32> to vector<2x32xf32>
    %12 = arith.addf %10, %11 : vector<2x32xf32>
    %c0_9 = arith.constant 0 : index
    %c0_10 = arith.constant 0 : index
    %13 = vector.load %arg4[%c0_9, %c0_10] : memref<32x16xf32, #tpu.memory_space<vmem>>, vector<32x16xf32>
    %cst_11 = arith.constant dense<0.000000e+00> : vector<2x16xf32>
    %14 = tpu.matmul %12, %13, %cst_11 {dimension_numbers = #tpu.dot_dimension_numbers<[1], [0], [0], [1], [0, 0, 1, 1], [], []>} : vector<2x32xf32>, vector<32x16xf32>, vector<2x16xf32> -> vector<2x16xf32>
    %c0_12 = arith.constant 0 : index
    %c0_13 = arith.constant 0 : index
    %15 = vector.load %arg5[%c0_12, %c0_13] : memref<1x16xf32, #tpu.memory_space<vmem>>, vector<1x16xf32>
    %16 = vector.broadcast %15 : vector<1x16xf32> to vector<2x16xf32>
    %17 = arith.addf %14, %16 : vector<2x16xf32>
    %c0_14 = arith.constant 0 : index
    %c0_15 = arith.constant 0 : index
    %18 = vector.load %arg6[%c0_14, %c0_15] : memref<16x64xf32, #tpu.memory_space<vmem>>, vector<16x64xf32>
    %cst_16 = arith.constant dense<0.000000e+00> : vector<2x64xf32>
    %19 = tpu.matmul %17, %18, %cst_16 {dimension_numbers = #tpu.dot_dimension_numbers<[1], [0], [0], [1], [0, 0, 1, 1], [], []>} : vector<2x16xf32>, vector<16x64xf32>, vector<2x64xf32> -> vector<2x64xf32>
    %c0_17 = arith.constant 0 : index
    %c0_18 = arith.constant 0 : index
    %20 = vector.load %arg7[%c0_17, %c0_18] : memref<1x64xf32, #tpu.memory_space<vmem>>, vector<1x64xf32>
    %21 = vector.broadcast %20 : vector<1x64xf32> to vector<2x64xf32>
    %22 = arith.addf %19, %21 : vector<2x64xf32>
    %23 = vector.extract_strided_slice %22 {offsets = [0, 0], sizes = [2, 32], strides = [1, 1]} : vector<2x64xf32> to vector<2x32xf32>
    %24 = vector.extract_strided_slice %22 {offsets = [0, 32], sizes = [2, 32], strides = [1, 1]} : vector<2x64xf32> to vector<2x32xf32>
    %25 = arith.maximumf %23, %24 : vector<2x32xf32>
    %26 = arith.subf %23, %25 : vector<2x32xf32>
    %27 = math.exp %26 : vector<2x32xf32>
    %28 = arith.subf %24, %25 : vector<2x32xf32>
    %29 = math.exp %28 : vector<2x32xf32>
    %30 = arith.addf %27, %29 : vector<2x32xf32>
    %cst_19 = arith.constant 1.000000e+00 : f32
    %31 = vector.broadcast %cst_19 : f32 to vector<2x32xf32>
    %32 = arith.divf %31, %30 : vector<2x32xf32>
    %33 = vector.shape_cast %7 : vector<128x64xf32> to vector<2x64x64xf32>
    %34 = vector.extract_strided_slice %33 {offsets = [0, 0, 0], sizes = [2, 64, 32], strides = [1, 1, 1]} : vector<2x64x64xf32> to vector<2x64x32xf32>
    %35 = arith.mulf %27, %32 : vector<2x32xf32>
    %36 = vector.shape_cast %35 : vector<2x32xf32> to vector<2x1x32xf32>
    %37 = vector.broadcast %36 : vector<2x1x32xf32> to vector<2x64x32xf32>
    %38 = arith.mulf %34, %37 : vector<2x64x32xf32>
    %39 = vector.extract_strided_slice %33 {offsets = [0, 0, 32], sizes = [2, 64, 32], strides = [1, 1, 1]} : vector<2x64x64xf32> to vector<2x64x32xf32>
    %40 = arith.mulf %29, %32 : vector<2x32xf32>
    %41 = vector.shape_cast %40 : vector<2x32xf32> to vector<2x1x32xf32>
    %42 = vector.broadcast %41 : vector<2x1x32xf32> to vector<2x64x32xf32>
    %43 = arith.mulf %39, %42 : vector<2x64x32xf32>
    %44 = arith.addf %38, %43 : vector<2x64x32xf32>
    %c0_20 = arith.constant 0 : index
    %c0_21 = arith.constant 0 : index
    %c0_22 = arith.constant 0 : index
    %45 = vector.load %arg8[%c0_20, %c0_21, %c0_22] : memref<2x64x32xf32, #tpu.memory_space<vmem>>, vector<2x64x32xf32>
    tpu.vector_store %arg8[%c0_20, %c0_21, %c0_22], %44 {strides = array<i32>} : memref<2x64x32xf32, #tpu.memory_space<vmem>>, vector<2x64x32xf32>,
    return
  }
}

</mosaic_0001>

<bundles_post_ra>
// kernel: skconv_forward_fn.1
= control target key start
LH: loop header
LB: loop body
LE: loop exit
PB: predicated region body
PF: predicated region fallthrough
CT: control target
= control target key end

     0   :  { %s1843_s0 = inlined_call_operand.vmem [shape: f32[128,288], index: 0, kind: input, shape index: {}]   ;;  %s1844_s1 = inlined_call_operand.vmem [shape: f32[288,64], index: 1, kind: input, shape index: {}]   ;;  %s1845_s2 = inlined_call_operand.vmem [shape: f32[1,64], index: 2, kind: input, shape index: {}]   ;;  %s1846_s3 = inlined_call_operand.vmem [shape: f32[2,128], index: 3, kind: input, shape index: {}]   ;;  %s1847_s4 = inlined_call_operand.vmem [shape: f32[32,16], index: 4, kind: input, shape index: {}]   ;;  %s1848_s5 = inlined_call_operand.vmem [shape: f32[1,16], index: 5, kind: input, shape index: {}]   ;;  %s1849_s6 = inlined_call_operand.vmem [shape: f32[16,64], index: 6, kind: input, shape index: {}]   ;;  %s1850_s7 = inlined_call_operand.vmem [shape: f32[1,64], index: 7, kind: input, shape index: {}]   ;;  %s1851_s8 = inlined_call_operand.hbm [shape: f32[2,64,32], index: 8, kind: output, shape index: {}]  }
   0x1   :  { %v94_v0 = vld [vmem:[%s1844_s1 + $0x80] sm:$0xff]  ;;  %v95_v1 = vld [vmem:[%s1844_s1 + $0x88] sm:$0xff]  ;;  %v96_v5 = vld [vmem:[%s1844_s1 + $0x90] sm:$0xff] }
   0x2   :  { %v78_v2 = vld [vmem:[%s1844_s1] sm:$0xff]  ;;  %v1188_v3 = vpack.c.bf16 %v95_v1, %v94_v0  ;;  %v79_v4 = vld [vmem:[%s1844_s1 + $0x8] sm:$0xff]  ;;  %v97_v6 = vld [vmem:[%s1844_s1 + $0x98] sm:$0xff] }
   0x3   :  { %v1190_v7 = vpack.c.bf16 %v79_v4, %v78_v2  ;;  %v1192_v8 = vpack.c.bf16 %v97_v6, %v96_v5  ;;  %v80_v9 = vld [vmem:[%s1844_s1 + $0x10] sm:$0xff]  ;;  %v81_v10 = vld [vmem:[%s1844_s1 + $0x18] sm:$0xff]  ;;  %v98_v11 = vld [vmem:[%s1844_s1 + $0xa0] sm:$0xff] }
   0x4   :  { %1189 = vmatprep.subr.bf16.mxu0 %v1188_v3  ;;  %1261 = vmatprep.subr.bf16.mxu1 %v1188_v3  ;;  %v99_v12 = vld [vmem:[%s1844_s1 + $0xa8] sm:$0xff]  ;;  %v1194_v13 = vpack.c.bf16 %v81_v10, %v80_v9  ;;  %v82_v15 = vld [vmem:[%s1844_s1 + $0x20] sm:$0xff]  ;;  %v100_v17 = vld [vmem:[%s1844_s1 + $0xb0] sm:$0xff] }
   0x5   :  { %1191 = vmatpush3.bf16.msra.mxu0 %v1190_v7  ;;  %1269 = vmatpush3.bf16.msra.mxu1 %v1190_v7  ;;  %v1196_v14 = vpack.c.bf16 %v99_v12, %v98_v11  ;;  %v83_v16 = vld [vmem:[%s1844_s1 + $0x28] sm:$0xff]  ;;  %v101_v18 = vld [vmem:[%s1844_s1 + $0xb8] sm:$0xff]  ;;  %v84_v21 = vld [vmem:[%s1844_s1 + $0x30] sm:$0xff] }
   0x6   :  { %1193 = vmatprep.subr.bf16.mxu0 %v1192_v8  ;;  %1262 = vmatprep.subr.bf16.mxu1 %v1192_v8  ;;  %v1198_v19 = vpack.c.bf16 %v83_v16, %v82_v15  ;;  %v1200_v20 = vpack.c.bf16 %v101_v18, %v100_v17  ;;  %v85_v22 = vld [vmem:[%s1844_s1 + $0x38] sm:$0xff]  ;;  %v102_v23 = vld [vmem:[%s1844_s1 + $0xc0] sm:$0xff]  ;;  %v103_v24 = vld [vmem:[%s1844_s1 + $0xc8] sm:$0xff] }
   0x7   :  { %v31_v25 = vld [vmem:[%s1843_s0 + $0x8] sm:$0xff]  ;;  %v73_v26 = vld [vmem:[%s1843_s0 + $0x158] sm:$0xff]  ;;  %v1202_v27 = vpack.c.bf16 %v85_v22, %v84_v21  ;;  %v1204_v28 = vpack.c.bf16 %v103_v24, %v102_v23  ;;  %v86_v29 = vld [vmem:[%s1844_s1 + $0x40] sm:$0xff] }
   0x8   :  { %234 = vmatprep.mubr.f32.mxu0 %v31_v25  ;;  %v87_v30 = vld [vmem:[%s1844_s1 + $0x48] sm:$0xff]  ;;  %v104_v31 = vld [vmem:[%s1844_s1 + $0xd0] sm:$0xff]  ;;  %v105_v32 = vld [vmem:[%s1844_s1 + $0xd8] sm:$0xff]  ;;  %304 = vmatprep.mubr.f32.mxu1 %v73_v26 }
   0x9   :  { %1195 = vmatpush3.bf16.msra.mxu0 %v1194_v13  ;;  %1270 = vmatpush3.bf16.msra.mxu1 %v1194_v13  ;;  %v1206_v33 = vpack.c.bf16 %v87_v30, %v86_v29  ;;  %v1208_v34 = vpack.c.bf16 %v105_v32, %v104_v31  ;;  %v88_v35 = vld [vmem:[%s1844_s1 + $0x50] sm:$0xff]  ;;  %v89_v36 = vld [vmem:[%s1844_s1 + $0x58] sm:$0xff]  ;;  %v106_v37 = vld [vmem:[%s1844_s1 + $0xe0] sm:$0xff] }
   0xa   :  { %1197 = vmatprep.subr.bf16.mxu0 %v1196_v14  ;;  %1263 = vmatprep.subr.bf16.mxu1 %v1196_v14  ;;  %v107_v38 = vld [vmem:[%s1844_s1 + $0xe8] sm:$0xff]  ;;  %v1210_v39 = vpack.c.bf16 %v89_v36, %v88_v35  ;;  %v90_v41 = vld [vmem:[%s1844_s1 + $0x60] sm:$0xff]  ;;  %v108_v43 = vld [vmem:[%s1844_s1 + $0xf0] sm:$0xff] }
   0xb   :  { %v1212_v40 = vpack.c.bf16 %v107_v38, %v106_v37  ;;  %v91_v42 = vld [vmem:[%s1844_s1 + $0x68] sm:$0xff]  ;;  %v109_v44 = vld [vmem:[%s1844_s1 + $0xf8] sm:$0xff]  ;;  %v92_v47 = vld [vmem:[%s1844_s1 + $0x70] sm:$0xff] }
   0xc   :  { %v1214_v45 = vpack.c.bf16 %v91_v42, %v90_v41  ;;  %v1216_v46 = vpack.c.bf16 %v109_v44, %v108_v43  ;;  %v93_v48 = vld [vmem:[%s1844_s1 + $0x78] sm:$0xff]  ;;  %v110_v49 = vld [vmem:[%s1844_s1 + $0x100] sm:$0xff]  ;;  %v111_v50 = vld [vmem:[%s1844_s1 + $0x108] sm:$0xff] }
   0xd   :  { %1199 = vmatpush3.bf16.msra.mxu0 %v1198_v19  ;;  %1271 = vmatpush3.bf16.msra.mxu1 %v1198_v19  ;;  %v1218_v51 = vpack.c.bf16 %v93_v48, %v92_v47 }
   0xe   :  { %1201 = vmatprep.subr.bf16.mxu0 %v1200_v20  ;;  %1264 = vmatprep.subr.bf16.mxu1 %v1200_v20 }
  0x11   :  { %1203 = vmatpush3.bf16.msra.mxu0 %v1202_v27  ;;  %1272 = vmatpush3.bf16.msra.mxu1 %v1202_v27 }
  0x12   :  { %1205 = vmatprep.subr.bf16.mxu0 %v1204_v28  ;;  %1265 = vmatprep.subr.bf16.mxu1 %v1204_v28 }
  0x15   :  { %1207 = vmatpush3.bf16.msra.mxu0 %v1206_v33  ;;  %1273 = vmatpush3.bf16.msra.mxu1 %v1206_v33 }
  0x16   :  { %1209 = vmatprep.subr.bf16.mxu0 %v1208_v34  ;;  %1266 = vmatprep.subr.bf16.mxu1 %v1208_v34 }
  0x19   :  { %1211 = vmatpush3.bf16.msra.mxu0 %v1210_v39  ;;  %1274 = vmatpush3.bf16.msra.mxu1 %v1210_v39 }
  0x1a   :  { %1213 = vmatprep.subr.bf16.mxu0 %v1212_v40  ;;  %1267 = vmatprep.subr.bf16.mxu1 %v1212_v40 }
  0x1d   :  { %1215 = vmatpush3.bf16.msra.mxu0 %v1214_v45  ;;  %1275 = vmatpush3.bf16.msra.mxu1 %v1214_v45 }
  0x1e   :  { %13 = vsyncpa [#allocation3], 0  ;;  %1217 = vmatprep.subr.bf16.mxu0 %v1216_v46  ;;  %1268 = vmatprep.subr.bf16.mxu1 %v1216_v46  ;;  %v1220_v52 = vpack.c.bf16 %v111_v50, %v110_v49  ;;  %v112_v53 = vld [vmem:[%s1844_s1 + $0x110] sm:$0xff]  ;;  %v113_v54 = vld [vmem:[%s1844_s1 + $0x118] sm:$0xff]  ;;  %vm121_vm0 = vcmask 261120   ;;  %v1316_v38 = vmov 0.0|0.0  }
  0x1f   :  { %v30_v55 = vld [vmem:[%s1843_s0] sm:$0xff]  ;;  %v72_v56 = vld [vmem:[%s1843_s0 + $0x150] sm:$0xff]  ;;  %v1224_v58 = vpack.c.bf16 %v113_v54, %v112_v53  ;;  %v33_v60 = vld [vmem:[%s1843_s0 + $0x18] sm:$0xff]  ;;  %vm1317_vm1 = vmmov 0   ;;  %v1318_v39 = vmov 0.0   ;;  %s1319_s23 = smov 96  }
  0x20   :  { %v34_v57 = vld [vmem:[%s1843_s0 + $0x20] sm:$0xff]  ;;  %v76_v59 = vld [vmem:[%s1843_s0 + $0x170] sm:$0xff]  ;;  %v75_v61 = vld [vmem:[%s1843_s0 + $0x168] sm:$0xff]  ;;  %vm645_vm2 = vcmask 130048  }
  0x21   :  { %1219 = vmatpush3.bf16.msra.mxu0 %v1218_v51  ;;  %1276 = vmatpush3.bf16.msra.mxu1 %v1218_v51  ;;  %v37_v62 = vld [vmem:[%s1843_s0 + $0x38] sm:$0xff]  ;;  %v32_v63 = vld [vmem:[%s1843_s0 + $0x10] sm:$0xff]  ;;  %v35_v1 = vld [vmem:[%s1843_s0 + $0x28] sm:$0xff] }
  0x22   :  { %1221 = vmatprep.subr.bf16.mxu1 %v1220_v52  ;;  %v36_v0 = vld [vmem:[%s1843_s0 + $0x30] sm:$0xff]  ;;  %v38_v3 = vld [vmem:[%s1843_s0 + $0x40] sm:$0xff]  ;;  %v39_v4 = vld [vmem:[%s1843_s0 + $0x48] sm:$0xff] }
  0x23   :  { %v40_v2 = vld [vmem:[%s1843_s0 + $0x50] sm:$0xff]  ;;  %v41_v5 = vld [vmem:[%s1843_s0 + $0x58] sm:$0xff]  ;;  %v43_v6 = vld [vmem:[%s1843_s0 + $0x68] sm:$0xff] }
  0x24   :  { %235 = vmatmul.mubr.f32.vlgmr.msra.gmra.mrb[0].mxu0 %v30_v55  ;;  %305 = vmatmul.mubr.f32.vlgmr.msra.gmra.mrb[0].mxu1 %v72_v56  ;;  %v44_v7 = vld [vmem:[%s1843_s0 + $0x70] sm:$0xff]  ;;  %v42_v8 = vld [vmem:[%s1843_s0 + $0x60] sm:$0xff]  ;;  %v47_v9 = vld [vmem:[%s1843_s0 + $0x88] sm:$0xff] }
  0x25   :  { %1223 = vmatpush3.bf16.msra.mxu1 %v1220_v52  ;;  %239 = vmatprep.mubr.f32.mxu0 %v34_v57  ;;  %v46_v10 = vld [vmem:[%s1843_s0 + $0x80] sm:$0xff]  ;;  %v45_v12 = vld [vmem:[%s1843_s0 + $0x78] sm:$0xff]  ;;  %v56_v15 = vld [vmem:[%s1843_s0 + $0xd0] sm:$0xff] }
  0x26   :  { %309 = vmatprep.mubr.f32.mxu1 %v76_v59  ;;  %1225 = vmatprep.subr.bf16.mxu1 %v1224_v58  ;;  %v50_v11 = vld [vmem:[%s1843_s0 + $0xa0] sm:$0xff]  ;;  %v53_v13 = vld [vmem:[%s1843_s0 + $0xb8] sm:$0xff]  ;;  %v48_v16 = vld [vmem:[%s1843_s0 + $0x90] sm:$0xff] }
  0x27   :  { %v49_v14 = vld [vmem:[%s1843_s0 + $0x98] sm:$0xff]  ;;  %v59_v17 = vld [vmem:[%s1843_s0 + $0xe8] sm:$0xff]  ;;  %v52_v18 = vld [vmem:[%s1843_s0 + $0xb0] sm:$0xff] }
  0x28   :  { %240 = vmatmul.mubr.f32.gmra.mrb[2].mxu0 %v33_v60  ;;  %310 = vmatmul.mubr.f32.gmra.mrb[2].mxu1 %v75_v61  ;;  %v62_v19 = vld [vmem:[%s1843_s0 + $0x100] sm:$0xff]  ;;  %v51_v20 = vld [vmem:[%s1843_s0 + $0xa8] sm:$0xff]  ;;  %v65_v21 = vld [vmem:[%s1843_s0 + $0x118] sm:$0xff] }
  0x29   :  { %1227 = vmatpush3.bf16.msra.mxu1 %v1224_v58  ;;  %244 = vmatprep.mubr.f32.mxu0 %v37_v62  ;;  %v55_v22 = vld [vmem:[%s1843_s0 + $0xc8] sm:$0xff]  ;;  %v68_v23 = vld [vmem:[%s1843_s0 + $0x130] sm:$0xff]  ;;  %v54_v24 = vld [vmem:[%s1843_s0 + $0xc0] sm:$0xff] }
  0x2a   :  { %1111 = vmatprep.mubr.msk.f32.mxu1 %vm121_vm0, %v32_v63  ;;  %v71_v25 = vld [vmem:[%s1843_s0 + $0x148] sm:$0xff]  ;;  %v58_v26 = vld [vmem:[%s1843_s0 + $0xe0] sm:$0xff]  ;;  %v57_v28 = vld [vmem:[%s1843_s0 + $0xd8] sm:$0xff]  ;;  %1228 = vmatprep.subr.bf16.mxu1 %v1316_v38 }
  0x2b   :  { %v74_v27 = vld [vmem:[%s1843_s0 + $0x160] sm:$0xff]  ;;  %v77_v29 = vld [vmem:[%s1843_s0 + $0x178] sm:$0xff]  ;;  %v60_v31 = vld [vmem:[%s1843_s0 + $0xf0] sm:$0xff] }
  0x2c   :  { %245 = vmatmul.mubr.f32.gmra.mrb[4].mxu0 %v36_v0  ;;  %1112 = vmatmul.mubr.msk.f32.vlgmr.msra.gmra.mrb[4].mxu1 %vm121_vm0, %v35_v1  ;;  %v61_v30 = vld [vmem:[%s1843_s0 + $0xf8] sm:$0xff]  ;;  %v64_v32 = vld [vmem:[%s1843_s0 + $0x110] sm:$0xff]  ;;  %v63_v33 = vld [vmem:[%s1843_s0 + $0x108] sm:$0xff] }
  0x2d   :  { %249 = vmatprep.mubr.f32.mxu0 %v40_v2  ;;  %1114 = vmatprep.mubr.msk.f32.mxu1 %vm121_vm0, %v38_v3  ;;  %v67_v34 = vld [vmem:[%s1843_s0 + $0x128] sm:$0xff]  ;;  %v66_v35 = vld [vmem:[%s1843_s0 + $0x120] sm:$0xff]  ;;  %v69_v37 = vld [vmem:[%s1843_s0 + $0x138] sm:$0xff] }
  0x2e   :  { %v70_v36 = vld [vmem:[%s1843_s0 + $0x140] sm:$0xff] }
  0x2f   :  { %v1646_v50 = vld [vmem:[%s1845_s2] ss:$0 sm:$0xff] }
  0x30   :  { %250 = vmatmul.mubr.f32.gmra.mrb[6].mxu0 %v39_v4  ;;  %1115 = vmatmul.mubr.msk.f32.gmra.mrb[6].mxu1 %vm121_vm0, %v41_v5 }
  0x31   :  { %254 = vmatprep.mubr.f32.mxu0 %v43_v6  ;;  %1117 = vmatprep.mubr.msk.f32.mxu1 %vm121_vm0, %v44_v7 }
  0x34   :  { %255 = vmatmul.mubr.f32.gmra.mrb[8].mxu0 %v42_v8  ;;  %1118 = vmatmul.mubr.msk.f32.gmra.mrb[8].mxu1 %vm121_vm0, %v47_v9 }
  0x35   :  { %259 = vmatprep.mubr.f32.mxu0 %v46_v10  ;;  %1120 = vmatprep.mubr.msk.f32.mxu1 %vm121_vm0, %v50_v11 }
  0x38   :  { %260 = vmatmul.mubr.f32.gmra.mrb[10].mxu0 %v45_v12  ;;  %1121 = vmatmul.mubr.msk.f32.gmra.mrb[10].mxu1 %vm121_vm0, %v53_v13 }
  0x39   :  { %264 = vmatprep.mubr.f32.mxu0 %v49_v14  ;;  %1123 = vmatprep.mubr.msk.f32.mxu1 %vm121_vm0, %v56_v15 }
  0x3c   :  { %265 = vmatmul.mubr.f32.gmra.mrb[12].mxu0 %v48_v16  ;;  %1124 = vmatmul.mubr.msk.f32.gmra.mrb[12].mxu1 %vm121_vm0, %v59_v17 }
  0x3d   :  { %269 = vmatprep.mubr.f32.mxu0 %v52_v18  ;;  %1126 = vmatprep.mubr.msk.f32.mxu1 %vm121_vm0, %v62_v19 }
  0x40   :  { %270 = vmatmul.mubr.f32.gmra.mrb[14].mxu0 %v51_v20  ;;  %1127 = vmatmul.mubr.msk.f32.gmra.mrb[14].mxu1 %vm121_vm0, %v65_v21 }
  0x41   :  { %274 = vmatprep.mubr.f32.mxu0 %v55_v22  ;;  %1129 = vmatprep.mubr.msk.f32.mxu1 %vm121_vm0, %v68_v23 }
  0x44   :  { %275 = vmatmul.mubr.f32.gmra.mrb[16].mxu0 %v54_v24  ;;  %1130 = vmatmul.mubr.msk.f32.gmra.mrb[16].mxu1 %vm121_vm0, %v71_v25 }
  0x45   :  { %279 = vmatprep.mubr.f32.mxu0 %v58_v26  ;;  %1132 = vmatprep.mubr.msk.f32.mxu1 %vm121_vm0, %v74_v27 }
  0x48   :  { %280 = vmatmul.mubr.f32.gmra.mrb[18].mxu0 %v57_v28  ;;  %1133 = vmatmul.mubr.msk.f32.gmra.mrb[18].mxu1 %vm121_vm0, %v77_v29 }
  0x49   :  { %284 = vmatprep.mubr.f32.mxu0 %v61_v30  ;;  %1167 = vmatprep.mubr.msk.f32.mxu1 %vm1317_vm1, %v1318_v39 }
  0x4c   :  { %285 = vmatmul.mubr.f32.gmra.mrb[20].mxu0 %v60_v31 }
  0x4d   :  { %289 = vmatprep.mubr.f32.mxu0 %v64_v32 }
  0x50   :  { %290 = vmatmul.mubr.f32.gmra.mrb[22].mxu0 %v63_v33 }
  0x51   :  { %294 = vmatprep.mubr.f32.mxu0 %v67_v34 }
  0x54   :  { %295 = vmatmul.mubr.f32.gmra.mrb[24].mxu0 %v66_v35 }
  0x55   :  { %299 = vmatprep.mubr.f32.mxu0 %v70_v36 }
  0x58   :  { %300 = vmatmul.mubr.f32.gmra.mrb[26].mxu0 %v69_v37 }
  0xf7   :  { %v1010_v40 = vpop.f32.mrb[0].mxu0  ;;  %v1052_v41 = vpop.f32.mrb[0].mxu1 }
  0xf8   :  { %v1011_v42 = vpop.f32.mrb[1].mxu0  ;;  %v1053_v43 = vpop.f32.mrb[1].mxu1 }
  0xf9   :  { %v1012_v44 = vadd.f32 %v1011_v42, %v1010_v40  ;;  %v1641_v45 = vadd.f32 %v1053_v43, %v1052_v41 }
  0xfb   :  { %v1013_v46 = vpop.f32.mrb[2].mxu0  ;;  %v1055_v47 = vpop.f32.mrb[2].mxu1  ;;  %v237_v56 = vadd.f32 %v1012_v44, %v1646_v50 }
  0xfc   :  { %v1014_v48 = vpop.f32.mrb[3].mxu0  ;;  %v1056_v49 = vpop.f32.mrb[3].mxu1 }
  0xfd   :  { %v1015_v51 = vadd.f32 %v1014_v48, %v1013_v46  ;;  %v1648_v52 = vadd.f32 %v1056_v49, %v1055_v47 }
  0xff   :  { %v1016_v53 = vpop.f32.mrb[4].mxu0  ;;  %v242_v54 = vadd.f32 %v1015_v51, %v1646_v50  ;;  %v1113_v55 = vpop.f32.mrb[4].mxu1 }
 0x100   :  { %v1017_v57 = vpop.f32.mrb[5].mxu0  ;;  %v381_v58 = vpop.f32.mrb[5].mxu1 }
 0x101   :  { %v387_v59 = vadd.f32 %v1113_v55, %v242_v54  ;;  %v1018_v60 = vadd.f32 %v1017_v57, %v1016_v53  ;;  %v382_v61 = vadd.f32 %v381_v58, %v237_v56  ;;  %v312_v54 = vadd.f32 %v1648_v52, %v1646_v50 }
 0x103   :  { %v1652_v62 = vmax.f32 %v387_v59, 0.0  ;;  %v1654_v63 = vmax.f32 %v382_v61, 0.0  ;;  %v1019_v0 = vpop.f32.mrb[6].mxu0  ;;  %v1116_v1 = vpop.f32.mrb[6].mxu1  ;;  %v247_v2 = vadd.f32 %v1018_v60, %v1646_v50  ;;  %v307_v60 = vadd.f32 %v1641_v45, %v1646_v50 }
 0x104   :  { %v1020_v3 = vpop.f32.mrb[7].mxu0  ;;  %v391_v4 = vpop.f32.mrb[7].mxu1 }
 0x105   :  { %v1229_v5 = vpack.c.bf16 %v1652_v62, %v1654_v63  ;;  %v1021_v6 = vadd.f32 %v1020_v3, %v1019_v0  ;;  %v392_v7 = vadd.f32 %v391_v4, %v247_v2 }
 0x107   :  { %v252_v8 = vadd.f32 %v1021_v6, %v1646_v50  ;;  %v1022_v9 = vpop.f32.mrb[8].mxu0  ;;  %1230 = vmatpush3.bf16.msra.mxu1 %v1229_v5  ;;  %v1119_v10 = vpop.f32.mrb[8].mxu1  ;;  %v1663_v16 = vmax.f32 %v392_v7, 0.0 }
 0x108   :  { %v1023_v11 = vpop.f32.mrb[9].mxu0  ;;  %v401_v12 = vpop.f32.mrb[9].mxu1  ;;  %1231 = vmatprep.subr.bf16.mxu1 %v1316_v38 }
 0x109   :  { %v397_v13 = vadd.f32 %v1116_v1, %v252_v8  ;;  %v1024_v14 = vadd.f32 %v1023_v11, %v1022_v9 }
 0x10b   :  { %v1661_v15 = vmax.f32 %v397_v13, 0.0  ;;  %v1025_v17 = vpop.f32.mrb[10].mxu0  ;;  %v257_v18 = vadd.f32 %v1024_v14, %v1646_v50  ;;  %v1122_v19 = vpop.f32.mrb[10].mxu1 }
 0x10c   :  { %v1026_v20 = vpop.f32.mrb[11].mxu0  ;;  %v411_v21 = vpop.f32.mrb[11].mxu1 }
 0x10d   :  { %v1232_v22 = vpack.c.bf16 %v1661_v15, %v1663_v16  ;;  %v1027_v23 = vadd.f32 %v1026_v20, %v1025_v17  ;;  %v402_v24 = vadd.f32 %v401_v12, %v257_v18 }
 0x10f   :  { %v262_v25 = vadd.f32 %v1027_v23, %v1646_v50  ;;  %v1028_v26 = vpop.f32.mrb[12].mxu0  ;;  %1233 = vmatpush3.bf16.msra.mxu1 %v1232_v22  ;;  %v1125_v27 = vpop.f32.mrb[12].mxu1  ;;  %v1672_v33 = vmax.f32 %v402_v24, 0.0 }
 0x110   :  { %v1029_v28 = vpop.f32.mrb[13].mxu0  ;;  %v421_v29 = vpop.f32.mrb[13].mxu1  ;;  %1234 = vmatprep.subr.bf16.mxu1 %v1316_v38 }
 0x111   :  { %v407_v30 = vadd.f32 %v1119_v10, %v262_v25  ;;  %v1030_v31 = vadd.f32 %v1029_v28, %v1028_v26 }
 0x113   :  { %v1670_v32 = vmax.f32 %v407_v30, 0.0  ;;  %v1031_v34 = vpop.f32.mrb[14].mxu0  ;;  %v267_v35 = vadd.f32 %v1030_v31, %v1646_v50  ;;  %v1128_v36 = vpop.f32.mrb[14].mxu1 }
 0x114   :  { %v1032_v37 = vpop.f32.mrb[15].mxu0  ;;  %v431_v40 = vpop.f32.mrb[15].mxu1 }
 0x115   :  { %v1235_v41 = vpack.c.bf16 %v1670_v32, %v1672_v33  ;;  %v1033_v42 = vadd.f32 %v1032_v37, %v1031_v34  ;;  %v412_v43 = vadd.f32 %v411_v21, %v267_v35 }
 0x117   :  { %v272_v44 = vadd.f32 %v1033_v42, %v1646_v50  ;;  %v1034_v46 = vpop.f32.mrb[16].mxu0  ;;  %1236 = vmatpush3.bf16.msra.mxu1 %v1235_v41  ;;  %v1131_v47 = vpop.f32.mrb[16].mxu1  ;;  %v1683_v56 = vmax.f32 %v412_v43, 0.0  ;;  %v476_v43 = vld [vmem:[%s1846_s3] sm:$0x3] }
 0x118   :  { %v1035_v48 = vpop.f32.mrb[17].mxu0  ;;  %v441_v49 = vpop.f32.mrb[17].mxu1  ;;  %1237 = vmatprep.subr.bf16.mxu1 %v1316_v38 }
 0x119   :  { %v417_v51 = vadd.f32 %v1122_v19, %v272_v44  ;;  %v1036_v53 = vadd.f32 %v1035_v48, %v1034_v46  ;;  %v552_v44 = vld [vmem:[%s1847_s4] sm:$0xff]  ;;  %v553_v46 = vld [vmem:[%s1847_s4 + $0x8] sm:$0xff] }
 0x11a   :  { %v1253_v48 = vpack.c.bf16 %v553_v46, %v552_v44 }
 0x11b   :  { %v1681_v55 = vmax.f32 %v417_v51, 0.0  ;;  %v277_v57 = vadd.f32 %v1036_v53, %v1646_v50  ;;  %v1037_v58 = vpop.f32.mrb[18].mxu0  ;;  %v1134_v59 = vpop.f32.mrb[18].mxu1 }
 0x11c   :  { %v457_v61 = vadd.f32 %v1134_v59, %v312_v54  ;;  %v1038_v0 = vpop.f32.mrb[19].mxu0  ;;  %v451_v1 = vpop.f32.mrb[19].mxu1  ;;  %v636_v59 = vld [vmem:[%s1849_s6] sm:$0xff] }
 0x11d   :  { %v1238_v2 = vpack.c.bf16 %v1681_v55, %v1683_v56  ;;  %v422_v3 = vadd.f32 %v421_v29, %v277_v57  ;;  %v1039_v4 = vadd.f32 %v1038_v0, %v1037_v58  ;;  %v452_v52 = vadd.f32 %v451_v1, %v307_v60 }
 0x11f   :  { %v282_v5 = vadd.f32 %v1039_v4, %v1646_v50  ;;  %v1040_v6 = vpop.f32.mrb[20].mxu0  ;;  %1239 = vmatpush3.bf16.msra.mxu1 %v1238_v2  ;;  %v1692_v10 = vmax.f32 %v422_v3, 0.0  ;;  %v1716_v41 = vmax.f32 %v452_v52, 0.0 }
 0x120   :  { %v1041_v7 = vpop.f32.mrb[21].mxu0  ;;  %1240 = vmatprep.subr.bf16.mxu1 %v1316_v38 }
 0x121   :  { %v427_v8 = vadd.f32 %v1125_v27, %v282_v5  ;;  %v1042_v9 = vadd.f32 %v1041_v7, %v1040_v6 }
 0x123   :  { %v1694_v45 = vmax.f32 %v427_v8, 0.0  ;;  %v287_v11 = vadd.f32 %v1042_v9, %v1646_v50  ;;  %v1043_v12 = vpop.f32.mrb[22].mxu0 }
 0x124   :  { %v1044_v13 = vpop.f32.mrb[23].mxu0 }
 0x125   :  { %v432_v14 = vadd.f32 %v431_v40, %v287_v11  ;;  %v1045_v17 = vadd.f32 %v1044_v13, %v1043_v12  ;;  %v1241_v18 = vpack.c.bf16 %v1694_v45, %v1692_v10  ;;  %v1714_v40 = vmax.f32 %v457_v61, 0.0  ;;  %v974_v61 = vld [vmem:[%s1848_s5] ss:$0 sm:$0xff]  ;;  %s1322_s5 = smov [#allocation2]  }
 0x127   :  { %v292_v19 = vadd.f32 %v1045_v17, %v1646_v50  ;;  %v1046_v20 = vpop.f32.mrb[24].mxu0  ;;  %1242 = vmatpush3.bf16.msra.mxu1 %v1241_v18  ;;  %v1701_v24 = vmax.f32 %v432_v14, 0.0 }
 0x128   :  { %v1047_v21 = vpop.f32.mrb[25].mxu0  ;;  %1243 = vmatprep.subr.bf16.mxu1 %v1316_v38 }
 0x129   :  { %v437_v22 = vadd.f32 %v1128_v36, %v292_v19  ;;  %v1048_v23 = vadd.f32 %v1047_v21, %v1046_v20  ;;  %v1321_v21 = vmov 1966171168  }
 0x12b   :  { %v1703_v25 = vmax.f32 %v437_v22, 0.0  ;;  %v297_v26 = vadd.f32 %v1048_v23, %v1646_v50  ;;  %v1049_v27 = vpop.f32.mrb[26].mxu0  ;;  %v744_v22 = vunpack.c.l.s4 %v1321_v21  ;;  %v746_v23 = vlaneseq }
 0x12c   :  { %v1050_v28 = vpop.f32.mrb[27].mxu0 }
 0x12d   :  { %v442_v29 = vadd.f32 %v441_v49, %v297_v26  ;;  %v1051_v30 = vadd.f32 %v1050_v28, %v1049_v27  ;;  %v1244_v31 = vpack.c.bf16 %v1703_v25, %v1701_v24  ;;  %v555_v49 = vld [vmem:[%s1847_s4 + $0x18] sm:$0xff]  ;;  %v745_v26 = vunpack.c.0.s8 %v744_v22 }
 0x12e   :  { %v747_v27 = vshrl.u32 %v746_v23, 7 }
 0x12f   :  { %v302_v34 = vadd.f32 %v1051_v30, %v1646_v50  ;;  %1245 = vmatpush3.bf16.msra.mxu1 %v1244_v31  ;;  %v1710_v36 = vmax.f32 %v442_v29, 0.0  ;;  %v1250_v50 = vpack.c.bf16 %v1714_v40, %v1716_v41 }
 0x130   :  { %1246 = vmatprep.subr.bf16.mxu1 %v1316_v38  ;;  %v748_v29 = vsub.s32 %v745_v26, %v747_v27 }
 0x131   :  { %v447_v35 = vadd.f32 %v1131_v47, %v302_v34  ;;  %v554_v47 = vld [vmem:[%s1847_s4 + $0x10] sm:$0xff]  ;;  %v1761_v34 = vsub.s32 0, %v747_v27 }
 0x132   :  { %v1256_v51 = vpack.c.bf16 %v555_v49, %v554_v47 }
 0x133   :  { %v1712_v37 = vmax.f32 %v447_v35, 0.0 }
 0x135   :  { %v1247_v42 = vpack.c.bf16 %v1712_v37, %v1710_v36 }
 0x137   :  { %1248 = vmatpush3.bf16.msra.mxu1 %v1247_v42 }
 0x138   :  { %1249 = vmatprep.subr.bf16.mxu1 %v1316_v38 }
 0x13b   :  { %1251 = vmatpush3.bf16.msra.mxu1 %v1250_v50 }
 0x13c   :  { %1252 = vmatprep.subr.bf16.mxu1 %v1316_v38 }
 0x13e   :  { %1168 = vmatmul.mubr.f32.vlgmr.msra.gmra.mrb[20].mxu1 %v476_v43 }
 0x13f   :  { %1178 = vmatprep.mubr.msk.f32.mxu1 %vm1317_vm1, %v1318_v39  ;;  %1254 = vmatpush3.bf16.msra.mxu1 %v1253_v48 }
 0x140   :  { %1255 = vmatprep.subr.bf16.mxu1 %v1316_v38 }
 0x143   :  { %1257 = vmatpush3.bf16.msra.mxu1 %v1256_v51 }
 0x144   :  { %1258 = vmatprep.subr.bf16.mxu1 %v1316_v38  ;;  %v637_v38 = vld [vmem:[%s1849_s6 + $0x8] sm:$0xff]  ;;  %s1320_s6 = smov 32  }
 0x145   :  { %v1259_v60 = vpack.c.bf16 %v637_v38, %v636_v59 }
 0x211   :  { %v543_v53 = vpop.f32.mrb[20].mxu1 }
 0x212   :  { %548 = vrot.lane.b32.xlu0 %v543_v53, %s1319_s23  ;;  %v1169_v54 = vpop.f32.mrb[21].mxu1 }
 0x284   :  { %v549_v57 = vpop.permute.xlu0 %548 }
 0x285   :  { %v551_v58 = vadd.f32 %v549_v57, %v543_v53 }
 0x287   :  { %1179 = vmatmul.mubr.msk.f32.vlgmr.msra.gmra.mrb[22].mxu1 %vm121_vm0, %v551_v58 }
 0x288   :  { %1185 = vmatprep.mubr.msk.f32.mxu1 %vm1317_vm1, %v1318_v39  ;;  %1260 = vmatpush3.bf16.msra.mxu1 %v1259_v60  ;;  %v976_v39 = vld [vmem:[%s1850_s7] ss:$0 sm:$0xff]  ;;  %s946_s7 = sshll.u32 %s1322_s5, 4  ;;  %s947_s7 = int_to_ptr.vmem [resolvable:$true] %s946_s7 }
 0x289   :  { %s1292_s9 = scalar_lea.vmem %s947_s7, 2048  ;;  %p1297_p1 = scmp.lt.s32.totalorder %s947_s7, %s947_s7 }
 0x28a   :  { %p1293_p0 = scmp.ne.s32.totalorder %s947_s7, %s1292_s9  ;;  %p1298_p2 = scmp.lt.s32.totalorder %s1292_s9, %s1292_s9 }
 0x28c   :  { %p1299_p3 = por %p1298_p2, %p1297_p1 }
 0x28e   :  { %p1300_p4 = pnand %p1299_p3, %p1293_p0 }
 0x35a   :  { %v632_v0 = vpop.f32.mrb[22].mxu1 }
 0x35b   :  { %v633_v1 = vadd.f32 %v974_v61, %v632_v0  ;;  %v1180_v2 = vpop.f32.mrb[23].mxu1 }
 0x35d   :  { %1186 = vmatmul.mubr.msk.f32.vlgmr.msra.gmra.mrb[24].mxu1 %vm645_vm2, %v633_v1 }
 0x430   :  { %v715_v3 = vpop.f32.mrb[24].mxu1 }
 0x431   :  { %v716_v4 = vadd.f32 %v976_v39, %v715_v3  ;;  %v1187_v52 = vpop.f32.mrb[25].mxu1 }
 0x433   :  { %720 = vrot.lane.b32.xlu0 %v716_v4, %s1319_s23 }
 0x4a5   :  { %v721_v5 = vpop.permute.xlu0 %720 }
 0x4a6   :  { %v723_v6 = vmax.f32 %v716_v4, %v721_v5 }
 0x4a8   :  { %728 = vrot.lane.b32.xlu1 %v723_v6, %s1320_s6  ;;  %v724_v12 = vsub.f32 %v716_v4, %v723_v6 }
 0x4aa   :  { %v725_v13 = vmul.f32 1.442695, %v724_v12 }
 0x51a   :  { %v729_v7 = vpop.permute.xlu1 %728 }
 0x51b   :  { %v731_v8 = vsub.f32 %v716_v4, %v729_v7 }
 0x51d   :  { %v732_v9 = vmul.f32 1.442695, %v731_v8 }
 0x51f   :  { %1286 = vpow2.f32 %v732_v9 }
 0x520   :  { %1288 = vpow2.f32 %v725_v13 }
 0x529   :  { %v1287_v11 = vpop.eup %1286 }
 0x52a   :  { %735 = vrot.lane.b32.xlu1 %v1287_v11, %s1319_s23  ;;  %v1289_v14 = vpop.eup %1288 }
 0x59c   :  { %v736_v17 = vpop.permute.xlu1 %735 }
 0x59d   :  { %v738_v18 = vadd.f32 %v1289_v14, %v736_v17 }
 0x59f   :  { %1290 = vrcp.f32 %v738_v18 }
 0x5a9   :  { %v1291_v19 = vpop.eup %1290 }
 0x5aa   :  { %v741_v20 = vmul.f32 %v1291_v19, %v1289_v14  ;;  %792 = vrot.lane.b32.xlu0 %v1291_v19, %s1320_s6 }
 0x5ac   :  { %v749_v39 = vrot.slane %v741_v20, %v748_v29 }
 0x5ae   :  { %v757_v3 = vrot.slane %v749_v39, %v748_v29 }
 0x5b0   :  { %v768_v4 = vrot.slane %v757_v3, %v1761_v34 }
 0x5b2   :  { %v776_v52 = vmul.f32 %v768_v4, %v1652_v62  ;;  %v775_v5 = vmul.f32 %v768_v4, %v1654_v63  ;;  %v778_v12 = vmul.f32 %v768_v4, %v1661_v15  ;;  %v777_v13 = vmul.f32 %v768_v4, %v1663_v16 }
 0x5b3   :  { %v779_v20 = vmul.f32 %v768_v4, %v1672_v33  ;;  %v781_v27 = vmul.f32 %v768_v4, %v1683_v56 }
 0x61c   :  { %v793_v28 = vpop.permute.xlu0 %792 }
 0x61d   :  { %v795_v30 = vmul.f32 %v1287_v11, %v793_v28  ;;  %v750_v11 = vcombine.high %v749_v39, %v749_v39 }
 0x61f   :  { %v803_v31 = vrot.slane %v795_v30, %v748_v29 }
 0x621   :  { %v811_v35 = vrot.slane %v803_v31, %v748_v29  ;;  %v804_v44 = vcombine.high %v803_v31, %v803_v31 }
 0x623   :  { %v822_v42 = vrot.slane %v811_v35, %v1761_v34  ;;  %v818_v48 = vrot.slane %v804_v44, %v748_v29 }
 0x625   :  { %v830_v50 = vmul.f32 %v822_v42, %v1652_v62  ;;  %v829_v43 = vmul.f32 %v822_v42, %v1654_v63  ;;  %v832_v46 = vmul.f32 %v822_v42, %v1661_v15  ;;  %v831_v47 = vmul.f32 %v822_v42, %v1663_v16 }
 0x626   :  { %v834_v49 = vmul.f32 %v822_v42, %v1670_v32  ;;  %v833_v51 = vmul.f32 %v822_v42, %v1672_v33  ;;  %v826_v53 = vrot.slane %v818_v48, %v1761_v34  ;;  %v836_v54 = vmul.f32 %v822_v42, %v1681_v55 }
 0x627   :  { %863 = vrot.lane.b32.xlu0 %v830_v50, %s1319_s23  ;;  %861 = vrot.lane.b32.xlu1 %v829_v43, %s1319_s23  ;;  %v835_v57 = vmul.f32 %v822_v42, %v1683_v56  ;;  %v764_v62 = vrot.slane %v750_v11, %v748_v29  ;;  %v780_v63 = vmul.f32 %v768_v4, %v1670_v32 }
 0x628   :  { %v838_v58 = vmul.f32 %v826_v53, %v1694_v45  ;;  %v837_v59 = vmul.f32 %v826_v53, %v1692_v10  ;;  %v840_v38 = vmul.f32 %v826_v53, %v1703_v25  ;;  %v839_v60 = vmul.f32 %v826_v53, %v1701_v24 }
 0x629   :  { %v842_v61 = vmul.f32 %v826_v53, %v1712_v37  ;;  %v841_v0 = vmul.f32 %v826_v53, %v1710_v36  ;;  %v844_v1 = vmul.f32 %v826_v53, %v1714_v40  ;;  %v843_v2 = vmul.f32 %v826_v53, %v1716_v41 }
 0x62a   :  { %v772_v15 = vrot.slane %v764_v62, %v1761_v34  ;;  %v782_v16 = vmul.f32 %v768_v4, %v1681_v55 }
 0x62b   :  { %867 = vrot.lane.b32.xlu0 %v832_v46, %s1319_s23  ;;  %865 = vrot.lane.b32.xlu1 %v831_v47, %s1319_s23 }
 0x62c   :  { %v784_v33 = vmul.f32 %v772_v15, %v1694_v45  ;;  %v783_v31 = vmul.f32 %v772_v15, %v1692_v10  ;;  %v786_v55 = vmul.f32 %v772_v15, %v1703_v25  ;;  %v785_v56 = vmul.f32 %v772_v15, %v1701_v24 }
 0x62d   :  { %v788_v10 = vmul.f32 %v772_v15, %v1712_v37  ;;  %v787_v45 = vmul.f32 %v772_v15, %v1710_v36  ;;  %v790_v24 = vmul.f32 %v772_v15, %v1714_v40  ;;  %v789_v25 = vmul.f32 %v772_v15, %v1716_v41 }
 0x62f   :  { %871 = vrot.lane.b32.xlu0 %v834_v49, %s1319_s23  ;;  %869 = vrot.lane.b32.xlu1 %v833_v51, %s1319_s23 }
 0x633   :  { %875 = vrot.lane.b32.xlu0 %v836_v54, %s1319_s23  ;;  %873 = vrot.lane.b32.xlu1 %v835_v57, %s1319_s23 }
 0x637   :  { %879 = vrot.lane.b32.xlu0 %v838_v58, %s1319_s23  ;;  %877 = vrot.lane.b32.xlu1 %v837_v59, %s1319_s23 }
 0x63b   :  { %883 = vrot.lane.b32.xlu0 %v840_v38, %s1319_s23  ;;  %881 = vrot.lane.b32.xlu1 %v839_v60, %s1319_s23 }
 0x63f   :  { %887 = vrot.lane.b32.xlu0 %v842_v61, %s1319_s23  ;;  %885 = vrot.lane.b32.xlu1 %v841_v0, %s1319_s23 }
 0x643   :  { %891 = vrot.lane.b32.xlu0 %v844_v1, %s1319_s23  ;;  %889 = vrot.lane.b32.xlu1 %v843_v2, %s1319_s23 }
 0x699   :  { %v864_v6 = vpop.permute.xlu0 %863  ;;  %v862_v7 = vpop.permute.xlu1 %861 }
 0x69a   :  { %v910_v8 = vadd.f32 %v864_v6, %v776_v52  ;;  %v909_v9 = vadd.f32 %v862_v7, %v775_v5 }
 0x69c   :  { %926 = vst.msk [vmem:[#allocation2 + $0x8] sm:$0xff] %vm121_vm0, %v910_v8  ;;  %925 = vst.msk [vmem:[#allocation2] sm:$0xff] %vm121_vm0, %v909_v9 }
 0x69d   :  { %v868_v14 = vpop.permute.xlu0 %867  ;;  %v866_v17 = vpop.permute.xlu1 %865 }
 0x69e   :  { %v912_v18 = vadd.f32 %v868_v14, %v778_v12  ;;  %v911_v19 = vadd.f32 %v866_v17, %v777_v13 }
 0x6a0   :  { %928 = vst.msk [vmem:[#allocation2 + $0x18] sm:$0xff] %vm121_vm0, %v912_v18  ;;  %927 = vst.msk [vmem:[#allocation2 + $0x10] sm:$0xff] %vm121_vm0, %v911_v19 }
 0x6a1   :  { %v872_v21 = vpop.permute.xlu0 %871  ;;  %v870_v22 = vpop.permute.xlu1 %869 }
 0x6a2   :  { %v914_v23 = vadd.f32 %v872_v21, %v780_v63  ;;  %v913_v26 = vadd.f32 %v870_v22, %v779_v20 }
 0x6a4   :  { %930 = vst.msk [vmem:[#allocation2 + $0x28] sm:$0xff] %vm121_vm0, %v914_v23  ;;  %929 = vst.msk [vmem:[#allocation2 + $0x20] sm:$0xff] %vm121_vm0, %v913_v26 }
 0x6a5   :  { %v876_v28 = vpop.permute.xlu0 %875  ;;  %v874_v29 = vpop.permute.xlu1 %873 }
 0x6a6   :  { %v916_v30 = vadd.f32 %v876_v28, %v782_v16  ;;  %v915_v32 = vadd.f32 %v874_v29, %v781_v27 }
 0x6a8   :  { %932 = vst.msk [vmem:[#allocation2 + $0x38] sm:$0xff] %vm121_vm0, %v916_v30  ;;  %931 = vst.msk [vmem:[#allocation2 + $0x30] sm:$0xff] %vm121_vm0, %v915_v32 }
 0x6a9   :  { %v880_v34 = vpop.permute.xlu0 %879  ;;  %v878_v35 = vpop.permute.xlu1 %877 }
 0x6aa   :  { %v918_v42 = vadd.f32 %v880_v34, %v784_v33  ;;  %v917_v50 = vadd.f32 %v878_v35, %v783_v31 }
 0x6ac   :  { %934 = vst.msk [vmem:[#allocation2 + $0x48] sm:$0xff] %vm121_vm0, %v918_v42  ;;  %933 = vst.msk [vmem:[#allocation2 + $0x40] sm:$0xff] %vm121_vm0, %v917_v50 }
 0x6ad   :  { %v884_v43 = vpop.permute.xlu0 %883  ;;  %v882_v44 = vpop.permute.xlu1 %881 }
 0x6ae   :  { %v920_v46 = vadd.f32 %v884_v43, %v786_v55  ;;  %v919_v47 = vadd.f32 %v882_v44, %v785_v56 }
 0x6b0   :  { %936 = vst.msk [vmem:[#allocation2 + $0x58] sm:$0xff] %vm121_vm0, %v920_v46  ;;  %935 = vst.msk [vmem:[#allocation2 + $0x50] sm:$0xff] %vm121_vm0, %v919_v47 }
 0x6b1   :  { %v888_v48 = vpop.permute.xlu0 %887  ;;  %v886_v49 = vpop.permute.xlu1 %885 }
 0x6b2   :  { %v922_v51 = vadd.f32 %v888_v48, %v788_v10  ;;  %v921_v53 = vadd.f32 %v886_v49, %v787_v45 }
 0x6b4   :  { %938 = vst.msk [vmem:[#allocation2 + $0x68] sm:$0xff] %vm121_vm0, %v922_v51  ;;  %937 = vst.msk [vmem:[#allocation2 + $0x60] sm:$0xff] %vm121_vm0, %v921_v53 }
 0x6b5   :  { %v892_v54 = vpop.permute.xlu0 %891  ;;  %v890_v57 = vpop.permute.xlu1 %889 }
 0x6b6   :  { %v924_v58 = vadd.f32 %v892_v54, %v790_v24  ;;  %v923_v37 = vadd.f32 %v890_v57, %v789_v25 }
 0x6b8   :  { %940 = vst.msk [vmem:[#allocation2 + $0x78] sm:$0xff] %vm121_vm0, %v924_v58  ;;  %939 = vst.msk [vmem:[#allocation2 + $0x70] sm:$0xff] %vm121_vm0, %v923_v37 }
 0x6b9   :  { %1303 = shalt.err (!%p1300_p4)
}
 0x6ba   :  { %s1304_s12 = scalar_lea.hbm %s1851_s8, 2048 }
 0x6bb   :  { %p1305_p5 = scmp.ne.s32.totalorder %s1851_s8, %s1304_s12  ;;  %p1308_p6 = scmp.lt.u32.totalorder %s1304_s12, %s1851_s8 }
 0x6bd   :  { %p1310_p7 = pnand %p1308_p6, %p1305_p5 }
 0x6bf   :  { %1313 = shalt.err (!%p1310_p7)
}
 0x6c0   :  { %s1323_s2 = smov 128   ;;  %s1324_s16 = smov 8  }
 0x6c1   :  { %952 = dma.vmem_to_hbm [thread:$0]  %s947_s7, 2048, %s1851_s8, [#allocation3], %s1323_s2, %s1323_s2, %s1324_s16  }
 0x6c2   :  { %1314 = dma.done.wait [#allocation3], 2048  }
 0x6c3   :  { %1315 = vsyncadd [#allocation3], 4294965248 }
 0x6c4   :  { %956 = vsyncpa [#allocation3], 1 }

</bundles_post_ra>
